<compile_context>
chip_gen: v5e
topology: v5e:2x2
jax: 0.10.0
libtpu: 0.0.40
codegen_flags: <defaults>
</compile_context>

<pallas_src>
import functools

import jax
import jax.numpy as jnp
import numpy as np
from jax.experimental import pallas as pl
from jax.experimental.pallas import tpu as pltpu


def _round_up(x, m):
    return ((x + m - 1) // m) * m


# ----------------------------- Pallas kernel -------------------------------

def baseblock_kernel(xp_ref, w1_ref, b1_ref, w2_ref, b2_ref, o_ref, h1pad_ref,
                     *, H, W):
    """Fused Baseblock in lane-dense (channels-on-sublanes, spatial-on-lanes) form.

    xp_ref:   (B, CIP, LP)  bf16  zero-padded, flattened images (row stride W+2)
    w*_ref:   (COP, 9*C*P)  bf16  BN-scale-folded packed conv weights
    b*_ref:   (COP, 1)      f32   folded BN/conv biases
    o_ref:    (B, COP, MPAD) f32  flattened NCHW-native output (row stride W+2)
    h1pad_ref:(COP, LP)     bf16  VMEM scratch holding the re-padded conv1 output
    """
    B = xp_ref.shape[0]
    LP = h1pad_ref.shape[1]
    COP = o_ref.shape[1]
    MPAD = o_ref.shape[2]

    Wp = W + 2
    M = H * Wp                       # valid flat output extent (stride-Wp layout)
    left = Wp + 1                    # interior of a padded image starts here
    offsets = [dy * Wp + dx for dy in range(3) for dx in range(3)]

    # Column-validity mask: zero the wrap (x >= W) and tail (>= M) columns so the
    # conv1 output can be re-padded with a single contiguous lane-slice store.
    col = jax.lax.broadcasted_iota(jnp.int32, (1, MPAD), 1)
    col_valid = ((col % Wp) < W) & (col < M)

    # Zero only the halo strips of the conv1-output scratch; the interior
    # [left, left + MPAD) is fully rewritten for every image below.
    h1pad_ref[:, :left] = jnp.zeros((COP, left), h1pad_ref.dtype)
    h1pad_ref[:, left + MPAD:] = jnp.zeros((COP, LP - left - MPAD), h1pad_ref.dtype)

    for b in range(B):                                     # static, B is tiny
        xp = xp_ref[b]                                     # (CIP, LP) bf16

        # conv1 (+ folded BN1) -> ReLU: one fat MXU contraction, f32 accumulation.
        p1 = jnp.concatenate([xp[:, o:o + MPAD] for o in offsets], axis=0)
        h1 = jnp.dot(w1_ref[...], p1, preferred_element_type=jnp.float32)
        h1 = jnp.where(col_valid, jnp.maximum(h1 + b1_ref[...], 0.0), 0.0)

        # Re-pad conv1 output inside VMEM: a single lane-dense store (no HBM trip).
        h1pad_ref[:, left:left + MPAD] = h1.astype(h1pad_ref.dtype)

        # conv2 (+ folded BN2) -> + identity residual -> ReLU.
        p2 = jnp.concatenate([h1pad_ref[:, o:o + MPAD] for o in offsets], axis=0)
        h2 = jnp.dot(w2_ref[...], p2, preferred_element_type=jnp.float32)
        res = xp[:, left:left + MPAD].astype(jnp.float32)  # same layout as h2
        o_ref[b] = jnp.maximum(h2 + b2_ref[...] + res, 0.0).astype(o_ref.dtype)


# ------------------------------- Wrapper -----------------------------------

def _fold_conv_bn(w_oihw, conv_b, gamma, beta, mean, var, cin_p, cout_p, eps=1e-5):
    """Fold eval-mode BN into the conv: y = (scale*W) * x + (beta + scale*(b - mean)).

    Returns packed weights (Cout_p, 9*Cin_p) bf16 with column order (dy, dx, ci)
    matching the in-kernel tap/channel concatenation, and bias (Cout_p, 1) f32.
    """
    cout, cin = w_oihw.shape[0], w_oihw.shape[1]
    scale = gamma / jnp.sqrt(var + eps)
    bias = beta + scale * (conv_b - mean)

    w = w_oihw * scale[:, None, None, None]                       # fold scale in f32
    w = jnp.transpose(w, (0, 2, 3, 1))                            # (Cout, 3, 3, Cin)
    w = jnp.pad(w, ((0, cout_p - cout), (0, 0), (0, 0), (0, cin_p - cin)))
    w = w.reshape(cout_p, 9 * cin_p).astype(jnp.bfloat16)
    bias = jnp.pad(bias, (0, cout_p - cout)).reshape(cout_p, 1).astype(jnp.float32)
    return w, bias


@jax.jit
def baseblock_forward(x_nchw, params):
    """Fused Baseblock forward on NCHW input (matches the PyTorch module interface)."""
    N, C, H, W = x_nchw.shape
    Cout = params["conv1_w"].shape[0]
    assert C == Cout, "identity-shortcut Baseblock requires Cin == Cout"

    Hp, Wp = H + 2, W + 2
    M = H * Wp                                   # valid flat extent (stride Wp)
    MPAD = _round_up(M, 128)                     # lane-dense output extent
    LP = _round_up(2 * Wp + 2 + MPAD, 128)       # >= max tap offset + MPAD (>= Hp*Wp)
    CIP = _round_up(C, 8)                        # channels padded to a sublane tile
    COP = _round_up(Cout, 8)

    # NCHW-native, zero-padded, flattened bf16 input: (N, CIP, LP), row stride Wp.
    xp = jnp.pad(x_nchw.astype(jnp.bfloat16),
                 ((0, 0), (0, CIP - C), (1, 1), (1, 1)))           # (N, CIP, Hp, Wp)
    xp = xp.reshape(N, CIP, Hp * Wp)
    xp = jnp.pad(xp, ((0, 0), (0, 0), (0, LP - Hp * Wp)))          # (N, CIP, LP)

    w1, b1 = _fold_conv_bn(params["conv1_w"], params["conv1_b"], params["bn1_g"],
                           params["bn1_b"], params["bn1_m"], params["bn1_v"], CIP, COP)
    w2, b2 = _fold_conv_bn(params["conv2_w"], params["conv2_b"], params["bn2_g"],
                           params["bn2_b"], params["bn2_m"], params["bn2_v"], COP, COP)

    # Two fat grid steps (one per v7x TensorCore); on single-TC v5e/v6e this costs
    # only one extra ~0.35us pipeline step versus a single whole-batch step.
    num_steps = 2 if (N >= 2 and N % 2 == 0) else 1
    B = N // num_steps

    grid_spec = pltpu.PrefetchScalarGridSpec(
        num_scalar_prefetch=0,
        grid=(num_steps,),
        in_specs=[
            pl.BlockSpec((B, CIP, LP), lambda s: (s, 0, 0)),
            pl.BlockSpec((COP, 9 * CIP), lambda s: (0, 0)),
            pl.BlockSpec((COP, 1), lambda s: (0, 0)),
            pl.BlockSpec((COP, 9 * COP), lambda s: (0, 0)),
            pl.BlockSpec((COP, 1), lambda s: (0, 0)),
        ],
        out_specs=pl.BlockSpec((B, COP, MPAD), lambda s: (s, 0, 0)),
        scratch_shapes=[pltpu.VMEM((COP, LP), jnp.bfloat16)],      # padded conv1 output
    )

    out_flat = pl.pallas_call(
        functools.partial(baseblock_kernel, H=H, W=W),
        out_shape=jax.ShapeDtypeStruct((N, COP, MPAD), jnp.float32),
        grid_spec=grid_spec,
        compiler_params=pltpu.CompilerParams(
            dimension_semantics=("parallel",),                     # megacore split (v7x)
        ),
    )(xp, w1, b1, w2, b2)

    # Undo the stride-Wp lane-dense layout: tiny XLA slice/reshape, no transposes.
    out = out_flat[:, :Cout, :M].reshape(N, Cout, H, Wp)[:, :, :, :W]
    return out


# ------------------------------ Reference ----------------------------------

def baseblock_reference(x, p, eps=1e-5):
    def conv(z, w, b):
        y = jax.lax.conv_general_dilated(
            z, w, window_strides=(1, 1), padding="SAME",
            dimension_numbers=("NCHW", "OIHW", "NCHW"))
        return y + b[None, :, None, None]

    def bn(z, g, be, m, v):
        return (g[None, :, None, None] * (z - m[None, :, None, None])
                / jnp.sqrt(v[None, :, None, None] + eps) + be[None, :, None, None])

    h = jax.nn.relu(bn(conv(x, p["conv1_w"], p["conv1_b"]),
                       p["bn1_g"], p["bn1_b"], p["bn1_m"], p["bn1_v"]))
    h = bn(conv(h, p["conv2_w"], p["conv2_b"]),
           p["bn2_g"], p["bn2_b"], p["bn2_m"], p["bn2_v"])
    return jax.nn.relu(h + x)


# --------------------------------- Main -------------------------------------

if __name__ == "__main__":
    key = jax.random.PRNGKey(0)
    ks = jax.random.split(key, 13)

    N, C, H, W = 2, 4, 16, 16          # input_planes = planes = 4, stride = 1
    planes = C

    params = {
        # conv weights stored OIHW, exactly like PyTorch nn.Conv2d
        "conv1_w": 0.1 * jax.random.normal(ks[0], (planes, C, 3, 3), jnp.float32),
        "conv1_b": 0.1 * jax.random.normal(ks[1], (planes,), jnp.float32),
        "bn1_g": 1.0 + 0.1 * jax.random.normal(ks[2], (planes,), jnp.float32),
        "bn1_b": 0.1 * jax.random.normal(ks[3], (planes,), jnp.float32),
        "bn1_m": 0.1 * jax.random.normal(ks[4], (planes,), jnp.float32),
        "bn1_v": 0.9 + 0.1 * jnp.abs(jax.random.normal(ks[5], (planes,), jnp.float32)),
        "conv2_w": 0.1 * jax.random.normal(ks[6], (planes, planes, 3, 3), jnp.float32),
        "conv2_b": 0.1 * jax.random.normal(ks[7], (planes,), jnp.float32),
        "bn2_g": 1.0 + 0.1 * jax.random.normal(ks[8], (planes,), jnp.float32),
        "bn2_b": 0.1 * jax.random.normal(ks[9], (planes,), jnp.float32),
        "bn2_m": 0.1 * jax.random.normal(ks[10], (planes,), jnp.float32),
        "bn2_v": 0.9 + 0.1 * jnp.abs(jax.random.normal(ks[11], (planes,), jnp.float32)),
    }

    x = jax.random.normal(ks[12], (N, C, H, W), jnp.float32)       # NCHW, like PyTorch

    out = jax.block_until_ready(baseblock_forward(x, params))
    ref = jax.block_until_ready(baseblock_reference(x, params))

    # Tolerance accounts for bf16 MXU operands / bf16 residual (f32 accumulation)
    # versus the all-f32 reference.
    np.testing.assert_allclose(np.asarray(out), np.asarray(ref), atol=2e-2, rtol=2e-2)

    print("KERNEL_OK")
</pallas_src>

<mosaic_0001>
module attributes {stable_mosaic.version = 11 : i64} {
  func.func @baseblock_kernel(%arg0: i32, %arg1: memref<1x8x512xbf16, #tpu.memory_space<vmem>>, %arg2: memref<8x72xbf16, #tpu.memory_space<vmem>>, %arg3: memref<8x1xf32, #tpu.memory_space<vmem>>, %arg4: memref<8x72xbf16, #tpu.memory_space<vmem>>, %arg5: memref<8x1xf32, #tpu.memory_space<vmem>>, %arg6: memref<1x8x384xf32, #tpu.memory_space<vmem>>, %arg7: memref<8x512xbf16, #tpu.memory_space<vmem>>) attributes {dimension_semantics = [#tpu.dimension_semantics<parallel>], iteration_bounds = array<i64: 2>, scalar_prefetch = 0 : i64, scratch_operands = 1 : i64, tpu.core_type = #tpu.core_type<tc>, window_params = [{transform_indices = @transform_0, window_bounds = array<i64: 1, 8, 512>}, {pipeline_mode = #tpu.pipeline_mode<synchronous>, transform_indices = @transform_1, window_bounds = array<i64: 8, 72>}, {pipeline_mode = #tpu.pipeline_mode<synchronous>, transform_indices = @transform_2, window_bounds = array<i64: 8, 1>}, {pipeline_mode = #tpu.pipeline_mode<synchronous>, transform_indices = @transform_3, window_bounds = array<i64: 8, 72>}, {pipeline_mode = #tpu.pipeline_mode<synchronous>, transform_indices = @transform_4, window_bounds = array<i64: 8, 1>}, {transform_indices = @transform_5, window_bounds = array<i64: 1, 8, 384>}]} {
    %0 = tpu.iota {dimensions = array<i32: 1>} : vector<1x384xi32>
    %c18_i32 = arith.constant 18 : i32
    %c0_i32 = arith.constant 0 : i32
    %1 = arith.cmpi eq, %c18_i32, %c0_i32 : i32
    %c1_i32 = arith.constant 1 : i32
    %2 = arith.select %1, %c1_i32, %c18_i32 : i32
    %3 = vector.broadcast %2 : i32 to vector<1x384xi32>
    %4 = arith.remsi %0, %3 : vector<1x384xi32>
    %c0_i32_0 = arith.constant 0 : i32
    %5 = vector.broadcast %c0_i32_0 : i32 to vector<1x384xi32>
    %6 = arith.cmpi ne, %4, %5 : vector<1x384xi32>
    %c0_i32_1 = arith.constant 0 : i32
    %7 = vector.broadcast %c0_i32_1 : i32 to vector<1x384xi32>
    %8 = arith.cmpi slt, %4, %7 : vector<1x384xi32>
    %c0_i32_2 = arith.constant 0 : i32
    %9 = arith.cmpi slt, %2, %c0_i32_2 : i32
    %10 = vector.broadcast %9 : i1 to vector<1x384xi1>
    %11 = vector.broadcast %10 : vector<1x384xi1> to vector<1x384xi1>
    %12 = arith.xori %8, %11 : vector<1x384xi1>
    %13 = arith.andi %12, %6 : vector<1x384xi1>
    %14 = vector.broadcast %2 : i32 to vector<1x384xi32>
    %15 = arith.addi %4, %14 : vector<1x384xi32>
    %16 = arith.select %13, %15, %4 : vector<1x384xi1>, vector<1x384xi32>
    %c16_i32 = arith.constant 16 : i32
    %17 = vector.broadcast %c16_i32 : i32 to vector<1x384xi32>
    %18 = arith.cmpi slt, %16, %17 : vector<1x384xi32>
    %c288_i32 = arith.constant 288 : i32
    %19 = vector.broadcast %c288_i32 : i32 to vector<1x384xi32>
    %20 = arith.cmpi slt, %0, %19 : vector<1x384xi32>
    %21 = arith.andi %18, %20 : vector<1x384xi1>
    %cst = arith.constant 0.000000e+00 : bf16
    %22 = vector.broadcast %cst : bf16 to vector<8x19xbf16>
    %c0 = arith.constant 0 : index
    %c0_3 = arith.constant 0 : index
    %23 = vector.load %arg7[%c0, %c0_3] : memref<8x512xbf16, #tpu.memory_space<vmem>>, vector<8x19xbf16>
    tpu.vector_store %arg7[%c0, %c0_3], %22 {strides = array<i32>} : memref<8x512xbf16, #tpu.memory_space<vmem>>, vector<8x19xbf16>,
    %cst_4 = arith.constant 0.000000e+00 : bf16
    %24 = vector.broadcast %cst_4 : bf16 to vector<8x109xbf16>
    %c0_5 = arith.constant 0 : index
    %c403 = arith.constant 403 : index
    %25 = vector.load %arg7[%c0_5, %c403] : memref<8x512xbf16, #tpu.memory_space<vmem>>, vector<8x109xbf16>
    tpu.vector_store %arg7[%c0_5, %c403], %24 {strides = array<i32>} : memref<8x512xbf16, #tpu.memory_space<vmem>>, vector<8x109xbf16>,
    %c0_6 = arith.constant 0 : index
    %c0_7 = arith.constant 0 : index
    %c0_8 = arith.constant 0 : index
    %26 = vector.load %arg1[%c0_6, %c0_7, %c0_8] : memref<1x8x512xbf16, #tpu.memory_space<vmem>>, vector<1x8x512xbf16>
    %27 = vector.shape_cast %26 : vector<1x8x512xbf16> to vector<8x512xbf16>
    %28 = vector.extract_strided_slice %27 {offsets = [0, 0], sizes = [8, 384], strides = [1, 1]} : vector<8x512xbf16> to vector<8x384xbf16>
    %29 = vector.extract_strided_slice %27 {offsets = [0, 1], sizes = [8, 384], strides = [1, 1]} : vector<8x512xbf16> to vector<8x384xbf16>
    %30 = vector.extract_strided_slice %27 {offsets = [0, 2], sizes = [8, 384], strides = [1, 1]} : vector<8x512xbf16> to vector<8x384xbf16>
    %31 = vector.extract_strided_slice %27 {offsets = [0, 18], sizes = [8, 384], strides = [1, 1]} : vector<8x512xbf16> to vector<8x384xbf16>
    %32 = vector.extract_strided_slice %27 {offsets = [0, 19], sizes = [8, 384], strides = [1, 1]} : vector<8x512xbf16> to vector<8x384xbf16>
    %33 = vector.extract_strided_slice %27 {offsets = [0, 20], sizes = [8, 384], strides = [1, 1]} : vector<8x512xbf16> to vector<8x384xbf16>
    %34 = vector.extract_strided_slice %27 {offsets = [0, 36], sizes = [8, 384], strides = [1, 1]} : vector<8x512xbf16> to vector<8x384xbf16>
    %35 = vector.extract_strided_slice %27 {offsets = [0, 37], sizes = [8, 384], strides = [1, 1]} : vector<8x512xbf16> to vector<8x384xbf16>
    %36 = vector.extract_strided_slice %27 {offsets = [0, 38], sizes = [8, 384], strides = [1, 1]} : vector<8x512xbf16> to vector<8x384xbf16>
    %37 = tpu.concatenate %28, %29, %30, %31, %32, %33, %34, %35, %36 in 0 : vector<8x384xbf16>, vector<8x384xbf16>, vector<8x384xbf16>, vector<8x384xbf16>, vector<8x384xbf16>, vector<8x384xbf16>, vector<8x384xbf16>, vector<8x384xbf16>, vector<8x384xbf16> -> vector<72x384xbf16>
    %c0_9 = arith.constant 0 : index
    %c0_10 = arith.constant 0 : index
    %38 = vector.load %arg2[%c0_9, %c0_10] : memref<8x72xbf16, #tpu.memory_space<vmem>>, vector<8x72xbf16>
    %cst_11 = arith.constant dense<0.000000e+00> : vector<8x384xf32>
    %39 = tpu.matmul %38, %37, %cst_11 {dimension_numbers = #tpu.dot_dimension_numbers<[1], [0], [0], [1], [0, 0, 1, 1], [], []>} : vector<8x72xbf16>, vector<72x384xbf16>, vector<8x384xf32> -> vector<8x384xf32>
    %c0_12 = arith.constant 0 : index
    %c0_13 = arith.constant 0 : index
    %40 = vector.load %arg3[%c0_12, %c0_13] : memref<8x1xf32, #tpu.memory_space<vmem>>, vector<8x1xf32>
    %41 = vector.broadcast %40 : vector<8x1xf32> to vector<8x384xf32>
    %42 = arith.addf %39, %41 : vector<8x384xf32>
    %cst_14 = arith.constant 0.000000e+00 : f32
    %43 = vector.broadcast %cst_14 : f32 to vector<8x384xf32>
    %44 = arith.maximumf %42, %43 : vector<8x384xf32>
    %cst_15 = arith.constant 0.000000e+00 : f32
    %45 = vector.shape_cast %21 : vector<1x384xi1> to vector<1x384xi1>
    %46 = vector.broadcast %45 : vector<1x384xi1> to vector<8x384xi1>
    %47 = vector.broadcast %cst_15 : f32 to vector<8x384xf32>
    %48 = arith.select %46, %44, %47 : vector<8x384xi1>, vector<8x384xf32>
    %49 = arith.truncf %48 : vector<8x384xf32> to vector<8x384xbf16>
    %c0_16 = arith.constant 0 : index
    %c19 = arith.constant 19 : index
    %50 = vector.load %arg7[%c0_16, %c19] : memref<8x512xbf16, #tpu.memory_space<vmem>>, vector<8x384xbf16>
    tpu.vector_store %arg7[%c0_16, %c19], %49 {strides = array<i32>} : memref<8x512xbf16, #tpu.memory_space<vmem>>, vector<8x384xbf16>,
    %c0_17 = arith.constant 0 : index
    %c0_18 = arith.constant 0 : index
    %51 = vector.load %arg7[%c0_17, %c0_18] : memref<8x512xbf16, #tpu.memory_space<vmem>>, vector<8x384xbf16>
    %c0_19 = arith.constant 0 : index
    %c1 = arith.constant 1 : index
    %52 = vector.load %arg7[%c0_19, %c1] : memref<8x512xbf16, #tpu.memory_space<vmem>>, vector<8x384xbf16>
    %c0_20 = arith.constant 0 : index
    %c2 = arith.constant 2 : index
    %53 = vector.load %arg7[%c0_20, %c2] : memref<8x512xbf16, #tpu.memory_space<vmem>>, vector<8x384xbf16>
    %c0_21 = arith.constant 0 : index
    %c18 = arith.constant 18 : index
    %54 = vector.load %arg7[%c0_21, %c18] : memref<8x512xbf16, #tpu.memory_space<vmem>>, vector<8x384xbf16>
    %c0_22 = arith.constant 0 : index
    %c19_23 = arith.constant 19 : index
    %55 = vector.load %arg7[%c0_22, %c19_23] : memref<8x512xbf16, #tpu.memory_space<vmem>>, vector<8x384xbf16>
    %c0_24 = arith.constant 0 : index
    %c20 = arith.constant 20 : index
    %56 = vector.load %arg7[%c0_24, %c20] : memref<8x512xbf16, #tpu.memory_space<vmem>>, vector<8x384xbf16>
    %c0_25 = arith.constant 0 : index
    %c36 = arith.constant 36 : index
    %57 = vector.load %arg7[%c0_25, %c36] : memref<8x512xbf16, #tpu.memory_space<vmem>>, vector<8x384xbf16>
    %c0_26 = arith.constant 0 : index
    %c37 = arith.constant 37 : index
    %58 = vector.load %arg7[%c0_26, %c37] : memref<8x512xbf16, #tpu.memory_space<vmem>>, vector<8x384xbf16>
    %c0_27 = arith.constant 0 : index
    %c38 = arith.constant 38 : index
    %59 = vector.load %arg7[%c0_27, %c38] : memref<8x512xbf16, #tpu.memory_space<vmem>>, vector<8x384xbf16>
    %60 = tpu.concatenate %51, %52, %53, %54, %55, %56, %57, %58, %59 in 0 : vector<8x384xbf16>, vector<8x384xbf16>, vector<8x384xbf16>, vector<8x384xbf16>, vector<8x384xbf16>, vector<8x384xbf16>, vector<8x384xbf16>, vector<8x384xbf16>, vector<8x384xbf16> -> vector<72x384xbf16>
    %c0_28 = arith.constant 0 : index
    %c0_29 = arith.constant 0 : index
    %61 = vector.load %arg4[%c0_28, %c0_29] : memref<8x72xbf16, #tpu.memory_space<vmem>>, vector<8x72xbf16>
    %cst_30 = arith.constant dense<0.000000e+00> : vector<8x384xf32>
    %62 = tpu.matmul %61, %60, %cst_30 {dimension_numbers = #tpu.dot_dimension_numbers<[1], [0], [0], [1], [0, 0, 1, 1], [], []>} : vector<8x72xbf16>, vector<72x384xbf16>, vector<8x384xf32> -> vector<8x384xf32>
    %63 = vector.extract_strided_slice %27 {offsets = [0, 19], sizes = [8, 384], strides = [1, 1]} : vector<8x512xbf16> to vector<8x384xbf16>
    %64 = arith.extf %63 : vector<8x384xbf16> to vector<8x384xf32>
    %c0_31 = arith.constant 0 : index
    %c0_32 = arith.constant 0 : index
    %65 = vector.load %arg5[%c0_31, %c0_32] : memref<8x1xf32, #tpu.memory_space<vmem>>, vector<8x1xf32>
    %66 = vector.broadcast %65 : vector<8x1xf32> to vector<8x384xf32>
    %67 = arith.addf %62, %66 : vector<8x384xf32>
    %68 = arith.addf %67, %64 : vector<8x384xf32>
    %cst_33 = arith.constant 0.000000e+00 : f32
    %69 = vector.broadcast %cst_33 : f32 to vector<8x384xf32>
    %70 = arith.maximumf %68, %69 : vector<8x384xf32>
    %c0_34 = arith.constant 0 : index
    %c0_35 = arith.constant 0 : index
    %c0_36 = arith.constant 0 : index
    %71 = vector.load %arg6[%c0_34, %c0_35, %c0_36] : memref<1x8x384xf32, #tpu.memory_space<vmem>>, vector<1x8x384xf32>
    %72 = vector.shape_cast %71 : vector<1x8x384xf32> to vector<8x384xf32>
    %73 = vector.shape_cast %70 : vector<8x384xf32> to vector<1x8x384xf32>
    tpu.vector_store %arg6[%c0_34, %c0_35, %c0_36], %73 {strides = array<i32>} : memref<1x8x384xf32, #tpu.memory_space<vmem>>, vector<1x8x384xf32>,
    return
  }
  func.func @transform_0(%arg0: i32) -> (i32, i32, i32) {
    %c0_i32 = arith.constant 0 : i32
    %c0_i32_0 = arith.constant 0 : i32
    %c0_i32_1 = arith.constant 0 : i32
    return %arg0, %c0_i32, %c0_i32_0 : i32, i32, i32
  }
  func.func @transform_1(%arg0: i32) -> (i32, i32) {
    %c0_i32 = arith.constant 0 : i32
    %c0_i32_0 = arith.constant 0 : i32
    %c0_i32_1 = arith.constant 0 : i32
    return %c0_i32, %c0_i32_0 : i32, i32
  }
  func.func @transform_2(%arg0: i32) -> (i32, i32) {
    %c0_i32 = arith.constant 0 : i32
    %c0_i32_0 = arith.constant 0 : i32
    %c0_i32_1 = arith.constant 0 : i32
    return %c0_i32, %c0_i32_0 : i32, i32
  }
  func.func @transform_3(%arg0: i32) -> (i32, i32) {
    %c0_i32 = arith.constant 0 : i32
    %c0_i32_0 = arith.constant 0 : i32
    %c0_i32_1 = arith.constant 0 : i32
    return %c0_i32, %c0_i32_0 : i32, i32
  }
  func.func @transform_4(%arg0: i32) -> (i32, i32) {
    %c0_i32 = arith.constant 0 : i32
    %c0_i32_0 = arith.constant 0 : i32
    %c0_i32_1 = arith.constant 0 : i32
    return %c0_i32, %c0_i32_0 : i32, i32
  }
  func.func @transform_5(%arg0: i32) -> (i32, i32, i32) {
    %c0_i32 = arith.constant 0 : i32
    %c0_i32_0 = arith.constant 0 : i32
    %c0_i32_1 = arith.constant 0 : i32
    return %arg0, %c0_i32, %c0_i32_0 : i32, i32, i32
  }
}

</mosaic_0001>

<bundles_post_ra>
// kernel: baseblock_forward.1
= control target key start
LH: loop header
LB: loop body
LE: loop exit
PB: predicated region body
PF: predicated region fallthrough
CT: control target
= control target key end

     0   :  { %s996_s18 = smov 0   ;;  %s1292_s0 = inlined_call_operand.vmem [shape: bf16[2,8,512], index: 0, kind: input, shape index: {}]   ;;  %s1293_s1 = inlined_call_operand.vmem [shape: bf16[8,72], index: 1, kind: input, shape index: {}]   ;;  %s1294_s2 = inlined_call_operand.vmem [shape: f32[8,1], index: 2, kind: input, shape index: {}]   ;;  %s1295_s3 = inlined_call_operand.vmem [shape: bf16[8,72], index: 3, kind: input, shape index: {}]   ;;  %s1296_s4 = inlined_call_operand.vmem [shape: f32[8,1], index: 4, kind: input, shape index: {}]   ;;  %s1297_s5 = inlined_call_operand.vmem [shape: f32[2,8,384], index: 5, kind: output, shape index: {}]  }
   0x1 LB: > { %s899_s19 = sadd.s32 4294967295, %s954_s18   ;;  %p903_p0 = scmp.ge.s32.totalorder %s954_s18, 1  ;;  %s954_s18 = sphi %s996_s18, %s15_s18  }
   0x2   : > { %p187_p1 = scmp.lt.s32.totalorder %s954_s18, 3 }
   0x4   : > { %p188_p2 = pnand %p903_p0, %p187_p1 }
   0x5   : > { %p215_p3 = scmp.lt.s32.totalorder (!%p188_p2), %s899_s19, 1  ;;  %s956_s24 = smov (!%p188_p2), 90  }
   0x6   : > { %191 = sbr.rel (%p188_p2) target bundleno = 816 (0x330), region = 40  ;;  %s957_s25 = smov (!%p188_p2), 92  }
   0x7   : > { %s958_s26 = smov (!%p188_p2), 91   ;;  %s959_s27 = smov (!%p188_p2), 109  }
   0x8   : > { %s960_s28 = smov (!%p188_p2), 108   ;;  %s961_s29 = smov (!%p188_p2), 126  }
   0x9   : > { %s962_s30 = smov (!%p188_p2), 110   ;;  %s963_s6 = smov (!%p188_p2), 127  }
   0xa   : > { %s965_s11 = smov (!%p188_p2), 19  }
   0xb   : > { %s1328_s19 = smov (!%p215_p3, %s899_s19), 1  ;;  %vm449_vm0 = vcmask 736256   ;;  %vm453_vm1 = vcmask 1043456   ;;  %vm425_vm2 = vcmask 752640   ;;  %vm437_vm3 = vcmask 744448   ;;  %v503_v56 = vld [vmem:[%s1294_s2] sm:$0xff] }
   0xc   : > { %s915_s20 = sshll.u32 %s1328_s19, 4  ;;  %vm1303_vm4 = vcmask 891904   ;;  %vm1302_vm5 = vcmask 883712   ;;  %vm1300_vm6 = vcmask 1031168   ;;  %vm1301_vm7 = vcmask 900096   ;;  %s916_s16 = smul.u32 24, %s1328_s19 }
   0xd   : > { %s219_s23 = scalar_lea.vmem %s1292_s0, %s915_s20  ;;  %v964_v57 = vmov 0   ;;  %vm1299_vm8 = vcmask 1039360   ;;  %vm1298_vm9 = vcmask 588800  }
   0xe   : > { %v1010_v0 = vld [vmem:[%s219_s23 + $0x8] sm:$0xff]  ;;  %v1012_v1 = vld [vmem:[%s219_s23] sm:$0xff]  ;;  %935 = vset.pattern.permute.xlu2 %v964_v57  ;;  %936 = vset.pattern.permute.xlu1 %v964_v57  ;;  %s224_s21 = scalar_lea.vmem %s1297_s5, %s916_s16 }
   0xf   : > { %v351_v2 = vunpack.c.l.b16 %v1010_v0  ;;  %v349_v3 = vunpack.c.l.b16 %v1012_v1  ;;  %v355_v6 = vunpack.c.h.b16 %v1010_v0  ;;  %v350_v7 = vunpack.c.h.b16 %v1012_v1  ;;  %947 = vset.pattern.permute.xlu0 %v964_v57 }
  0x11   : > { %v1016_v4 = vpack.c.b16 %v351_v2, %v351_v2  ;;  %v1018_v5 = vpack.c.b16 %v349_v3, %v349_v3  ;;  %v356_v8 = vpack.c.b16 %v355_v6, %v355_v6  ;;  %v1028_v9 = vpack.c.b16 %v350_v7, %v350_v7 }
  0x13   : > { %445 = vrot.lane.b32.xlu0 %v1016_v4, %s956_s24  ;;  %441 = vrot.lane.b32.xlu1 %v1018_v5, %s956_s24 }
  0x14   : > { %421 = vrot.lane.b32.xlu2 %v1016_v4, %s957_s25 }
  0x1b   : > { %447 = vrot.lane.b32.xlu0 %v356_v8, %s956_s24  ;;  %443 = vrot.lane.b32.xlu1 %v1028_v9, %s956_s24 }
  0x1c   : > { %423 = vrot.lane.b32.xlu2 %v356_v8, %s957_s25 }
  0x23   : > { %433 = vrot.lane.b32.xlu0 %v1016_v4, %s958_s26  ;;  %435 = vrot.lane.b32.xlu1 %v356_v8, %s958_s26 }
  0x24   : > { %417 = vrot.lane.b32.xlu2 %v1018_v5, %s957_s25 }
  0x2b   : > { %419 = vrot.lane.b32.xlu0 %v1028_v9, %s957_s25  ;;  %429 = vrot.lane.b32.xlu1 %v1018_v5, %s958_s26 }
  0x2c   : > { %431 = vrot.lane.b32.xlu2 %v1028_v9, %s958_s26 }
  0x33   : > { %397 = vrot.lane.b32.xlu0 %v1016_v4, %s959_s27  ;;  %399 = vrot.lane.b32.xlu1 %v356_v8, %s959_s27 }
  0x34   : > { %409 = vrot.lane.b32.xlu2 %v1016_v4, %s960_s28 }
  0x3b   : > { %411 = vrot.lane.b32.xlu0 %v356_v8, %s960_s28  ;;  %393 = vrot.lane.b32.xlu1 %v1018_v5, %s959_s27 }
  0x3c   : > { %395 = vrot.lane.b32.xlu2 %v1028_v9, %s959_s27 }
  0x43   : > { %405 = vrot.lane.b32.xlu0 %v1018_v5, %s960_s28  ;;  %407 = vrot.lane.b32.xlu1 %v1028_v9, %s960_s28 }
  0x44   : > { %373 = vrot.lane.b32.xlu2 %v1016_v4, %s961_s29 }
  0x4b   : > { %375 = vrot.lane.b32.xlu0 %v356_v8, %s961_s29  ;;  %385 = vrot.lane.b32.xlu1 %v1016_v4, %s962_s30 }
  0x4c   : > { %387 = vrot.lane.b32.xlu2 %v356_v8, %s962_s30 }
  0x53   : > { %369 = vrot.lane.b32.xlu0 %v1018_v5, %s961_s29  ;;  %371 = vrot.lane.b32.xlu1 %v1028_v9, %s961_s29 }
  0x54   : > { %381 = vrot.lane.b32.xlu2 %v1018_v5, %s962_s30 }
  0x5b   : > { %383 = vrot.lane.b32.xlu0 %v1028_v9, %s962_s30  ;;  %361 = vrot.lane.b32.xlu1 %v1016_v4, %s963_s6 }
  0x5c   : > { %363 = vrot.lane.b32.xlu2 %v356_v8, %s963_s6 }
  0x63   : > { %357 = vrot.lane.b32.xlu0 %v1018_v5, %s963_s6  ;;  %359 = vrot.lane.b32.xlu1 %v1028_v9, %s963_s6 }
  0x64   : > { %506 = vperm.xlu2 %935, %v503_v56  }
  0x6e   : > { %v422_v10 = vpop.permute.xlu2 %421 }
  0x76   : > { %v424_v11 = vpop.permute.xlu2 %423 }
  0x77   : > { %v428_v26 = vsel %vm425_vm2, %v422_v10, %v424_v11 }
  0x7e   : > { %v418_v14 = vpop.permute.xlu2 %417 }
  0x85   : > { %v446_v12 = vpop.permute.xlu0 %445  ;;  %v442_v13 = vpop.permute.xlu1 %441 }
  0x86   : > { %v432_v23 = vpop.permute.xlu2 %431 }
  0x8d   : > { %v448_v15 = vpop.permute.xlu0 %447  ;;  %v444_v16 = vpop.permute.xlu1 %443 }
  0x8e   : > { %v450_v17 = vsel %vm449_vm0, %v442_v13, %v444_v16  ;;  %v451_v18 = vsel %vm449_vm0, %v444_v16, %v446_v12  ;;  %v452_v19 = vsel %vm449_vm0, %v446_v12, %v448_v15  ;;  %v410_v29 = vpop.permute.xlu2 %409 }
  0x8f   : > { %v514_v20 = vsel %vm453_vm1, %v450_v17, 0  ;;  %v517_v21 = vsel %vm453_vm1, %v451_v18, 0  ;;  %v520_v22 = vsel %vm453_vm1, %v452_v19, 0  ;;  %v502_v18 = vld [vmem:[%s1293_s1] sm:$0xf] }
  0x90   : > { %525 = vmatpush.bf16.msra.mxu0 %v514_v20  ;;  %538 = vmatpush.bf16.msra.mxu1 %v517_v21 }
  0x91   : > { %551 = vmatpush.bf16.msra.mxu2 %v520_v22 }
  0x95   : > { %v434_v24 = vpop.permute.xlu0 %433  ;;  %v436_v25 = vpop.permute.xlu1 %435 }
  0x96   : > { %v440_v27 = vsel %vm437_vm3, %v434_v24, %v436_v25  ;;  %v439_v32 = vsel %vm437_vm3, %v432_v23, %v434_v24  ;;  %v396_v38 = vpop.permute.xlu2 %395  ;;  %v226_v24 = vlaneseq }
  0x97   : > { %v500_v28 = vsel %vm453_vm1, %v428_v26, %v440_v27 }
  0x98   : > { %552 = vmatpush.bf16.msra.mxu2 %v500_v28  ;;  %v1134_v25 = vand.u32 127, %v226_v24 }
  0x9a   : > { %v1137_v26 = vadd.s32 256, %v1134_v25  ;;  %v233_v27 = vand.u32 65535, %v1134_v25  ;;  %v1141_v28 = vadd.s32 128, %v1134_v25 }
  0x9d   : > { %v420_v30 = vpop.permute.xlu0 %419  ;;  %v430_v31 = vpop.permute.xlu1 %429 }
  0x9e   : > { %v426_v33 = vsel %vm425_vm2, %v418_v14, %v420_v30  ;;  %v427_v34 = vsel %vm425_vm2, %v420_v30, %v422_v10  ;;  %v438_v35 = vsel %vm437_vm3, %v430_v31, %v432_v23  ;;  %v374_v41 = vpop.permute.xlu2 %373  ;;  %v234_v31 = vshrl.u32 %v1134_v25, 16 }
  0x9f   : > { %v492_v36 = vsel %vm453_vm1, %v426_v33, %v438_v35  ;;  %v496_v37 = vsel %vm453_vm1, %v427_v34, %v439_v32  ;;  %v237_v32 = vmul.u32 58254, %v233_v27  ;;  %v263_v33 = vshrl.u32 %v1141_v28, 16 }
  0xa0   : > { %526 = vmatpush.bf16.msra.mxu0 %v492_v36  ;;  %539 = vmatpush.bf16.msra.mxu1 %v496_v37 }
  0xa5   : > { %v398_v39 = vpop.permute.xlu0 %397  ;;  %v400_v40 = vpop.permute.xlu1 %399 }
  0xa6   : > { %v404_v44 = vsel %vm1303_vm4, %v398_v39, %v400_v40  ;;  %v403_v49 = vsel %vm1303_vm4, %v396_v38, %v398_v39  ;;  %v388_v55 = vpop.permute.xlu2 %387  ;;  %v238_v39 = vmul.u32 14564, %v234_v31  ;;  %v240_v40 = vshll.u32 %v237_v32, 16 }
  0xad   : > { %v412_v42 = vpop.permute.xlu0 %411  ;;  %v394_v43 = vpop.permute.xlu1 %393 }
  0xae   : > { %v416_v45 = vsel %vm1302_vm5, %v410_v29, %v412_v42  ;;  %v402_v50 = vsel %vm1303_vm4, %v394_v43, %v396_v38  ;;  %v382_v63 = vpop.permute.xlu2 %381  ;;  %v236_v38 = vmul.u32 14564, %v233_v27  ;;  %v267_v42 = vmul.u32 14564, %v263_v33 }
  0xaf   : > { %v488_v46 = vsel %vm453_vm1, %v404_v44, %v416_v45  ;;  %vm337_vm4 = vcmp.lt.s32.totalorder %v1137_v26, 288 }
  0xb0   : > { %553 = vmatpush.bf16.msra.mxu2 %v488_v46  ;;  %vm244_vm11 = vc.u32 %v236_v38, %v240_v40 }
  0xb5   : > { %v406_v47 = vpop.permute.xlu0 %405  ;;  %v408_v48 = vpop.permute.xlu1 %407 }
  0xb6   : > { %v414_v51 = vsel %vm1302_vm5, %v406_v47, %v408_v48  ;;  %v415_v52 = vsel %vm1302_vm5, %v408_v48, %v410_v29  ;;  %v364_v6 = vpop.permute.xlu2 %363  ;;  %v292_v29 = vshrl.u32 %v1137_v26, 16  ;;  %v242_v47 = vshll.u32 %v238_v39, 16 }
  0xb7   : > { %v480_v53 = vsel %vm453_vm1, %v402_v50, %v414_v51  ;;  %v484_v54 = vsel %vm453_vm1, %v403_v49, %v415_v52  ;;  %v246_v48 = vadd.s32 %v240_v40, %v236_v38  ;;  %v271_v50 = vshll.u32 %v267_v42, 16 }
  0xb8   : > { %527 = vmatpush.bf16.msra.mxu0 %v480_v53  ;;  %540 = vmatpush.bf16.msra.mxu1 %v484_v54  ;;  %v296_v36 = vmul.u32 14564, %v292_v29  ;;  %v297_v46 = vmul.u32 58254, %v292_v29  ;;  %v239_v52 = vmul.u32 58254, %v234_v31  ;;  %v245_v53 = vsel %vm244_vm11, 1, %v964_v57 }
  0xb9   : > { %v268_v54 = vmul.u32 58254, %v263_v33  ;;  %vm248_vm14 = vc.u32 %v246_v48, %v242_v47  ;;  %vm343_vm11 = vcmask 1043608  }
  0xba   : > { %v300_v44 = vshll.u32 %v296_v36, 16  ;;  %344 = vst.msk [vmem:[#allocation2 + $0xc] sm:$0xf] %vm343_vm11, %v964_v57 }
  0xbd   : > { %v376_v58 = vpop.permute.xlu0 %375  ;;  %v386_v59 = vpop.permute.xlu1 %385 }
  0xbe   : > { %v380_v60 = vsel %vm1300_vm6, %v374_v41, %v376_v58  ;;  %v392_v61 = vsel %vm1301_vm7, %v386_v59, %v388_v55 }
  0xbf   : > { %v476_v62 = vsel %vm453_vm1, %v380_v60, %v392_v61  ;;  %v249_v60 = vsel %vm248_vm14, 1, %v964_v57 }
  0xc0   : > { %554 = vmatpush.bf16.msra.mxu2 %v476_v62 }
  0xc5   : > { %v370_v2 = vpop.permute.xlu0 %369  ;;  %v372_v3 = vpop.permute.xlu1 %371 }
  0xc6   : > { %v378_v7 = vsel %vm1300_vm6, %v370_v2, %v372_v3  ;;  %v379_v11 = vsel %vm1300_vm6, %v372_v3, %v374_v41  ;;  %v241_v3 = vshrl.u32 %v237_v32, 16  ;;  %v507_v32 = vpop.permute.xlu2 %506 }
  0xcd   : > { %v384_v8 = vpop.permute.xlu0 %383  ;;  %v362_v10 = vpop.permute.xlu1 %361 }
  0xce   : > { %v390_v12 = vsel %vm1301_vm7, %v382_v63, %v384_v8  ;;  %v391_v13 = vsel %vm1301_vm7, %v384_v8, %v386_v59  ;;  %v368_v14 = vsel %vm1299_vm8, %v362_v10, %v364_v6  ;;  %v247_v59 = vadd.s32 %v245_v53, %v239_v52 }
  0xcf   : > { %v468_v15 = vsel %vm453_vm1, %v378_v7, %v390_v12  ;;  %v472_v16 = vsel %vm453_vm1, %v379_v11, %v391_v13  ;;  %v464_v17 = vsel %vm453_vm1, %v1016_v4, %v368_v14  ;;  %v243_v12 = vshrl.u32 %v238_v39, 16 }
  0xd0   : > { %528 = vmatpush.bf16.msra.mxu0 %v468_v15  ;;  %541 = vmatpush.bf16.msra.mxu1 %v472_v16  ;;  %v251_v6 = vadd.s32 %v249_v60, %v247_v59  ;;  %v272_v14 = vshrl.u32 %v267_v42, 16 }
  0xd1   : > { %555 = vmatpush.bf16.msra.mxu2 %v464_v17 }
  0xd2   : > { %v252_v13 = vadd.s32 %v251_v6, %v241_v3 }
  0xd4   : > { %909 = vmatmul.msk.bf16.vlgmr.msra.gmra.mxu2 %vm1298_vm9, %v502_v18  ;;  %v253_v17 = vadd.s32 %v252_v13, %v243_v12 }
  0xd5   : > { %v358_v19 = vpop.permute.xlu0 %357  ;;  %v360_v20 = vpop.permute.xlu1 %359 }
  0xd6   : > { %v366_v21 = vsel %vm1299_vm8, %v358_v19, %v360_v20  ;;  %v367_v22 = vsel %vm1299_vm8, %v360_v20, %v362_v10  ;;  %v301_v10 = vshrl.u32 %v296_v36, 16  ;;  %v254_v20 = vshrl.u32 %v253_v17, 4 }
  0xd7   : > { %v456_v23 = vsel %vm453_vm1, %v1018_v5, %v366_v21  ;;  %v460_v4 = vsel %vm453_vm1, %v1028_v9, %v367_v22  ;;  %v291_v5 = vand.u32 65535, %v1137_v26  ;;  %v262_v9 = vand.u32 65535, %v1141_v28 }
  0xd8   : > { %529 = vmatpush.bf16.msra.mxu0 %v456_v23  ;;  %542 = vmatpush.bf16.msra.mxu1 %v460_v4  ;;  %v255_v23 = vmul.u32 18, %v254_v20 }
  0xd9   : > { %v295_v30 = vmul.u32 58254, %v291_v5  ;;  %v266_v34 = vmul.u32 58254, %v262_v9  ;;  %v294_v35 = vmul.u32 14564, %v291_v5  ;;  %v265_v41 = vmul.u32 14564, %v262_v9 }
  0xda   : > { %v256_v27 = vsub.s32 %v1134_v25, %v255_v23 }
  0xdb   : > { %907 = vmatmul.msk.bf16.vlgmr.msra.gmra.mxu0 %vm1298_vm9, %v502_v18  ;;  %908 = vmatmul.msk.bf16.vlgmr.msra.gmra.mxu1 %vm1298_vm9, %v502_v18  ;;  %v298_v37 = vshll.u32 %v295_v30, 16  ;;  %v269_v43 = vshll.u32 %v266_v34, 16  ;;  %v299_v62 = vshrl.u32 %v295_v30, 16  ;;  %v270_v7 = vshrl.u32 %v266_v34, 16 }
  0xdc   : > { %vm317_vm14 = vcmp.ne.s32.totalorder %v256_v27, 0  ;;  %v326_v29 = vadd.s32 18, %v256_v27 }
  0xdd   : > { %vm302_vm10 = vc.u32 %v294_v35, %v298_v37  ;;  %v304_v45 = vadd.s32 %v298_v37, %v294_v35  ;;  %vm273_vm12 = vc.u32 %v265_v41, %v269_v43  ;;  %v275_v51 = vadd.s32 %v269_v43, %v265_v41 }
  0xde   : > { %v303_v49 = vsel %vm302_vm10, 1, %v964_v57  ;;  %v274_v56 = vsel %vm273_vm12, 1, %v964_v57  ;;  %vm341_vm10 = vcmask 150528  }
  0xdf   : > { %vm306_vm13 = vc.u32 %v304_v45, %v300_v44  ;;  %v305_v55 = vadd.s32 %v303_v49, %v297_v46  ;;  %vm277_vm15 = vc.u32 %v275_v51, %v271_v50  ;;  %v276_v61 = vadd.s32 %v274_v56, %v268_v54  ;;  %342 = vst.msk [vmem:[#allocation2] sm:$0xf] %vm341_vm10, %v964_v57 }
  0xe0   : > { %v307_v58 = vsel %vm306_vm13, 1, %v964_v57  ;;  %v278_v2 = vsel %vm277_vm15, 1, %v964_v57  ;;  %vm320_vm15 = vcmp.lt.s32.totalorder %v256_v27, 0 }
  0xe1   : > { %v309_v63 = vadd.s32 %v307_v58, %v305_v55  ;;  %v280_v8 = vadd.s32 %v278_v2, %v276_v61  ;;  %vm1160_vm6 = vmand %vm320_vm15, %vm317_vm14  ;;  %vm1308_vm15 = vcmask 900096  }
  0xe2   : > { %v329_v25 = vsel %vm1160_vm6, %v326_v29, %v256_v27  ;;  %vm590_vm6 = vcmask 1047556  }
  0xe3   : > { %v310_v11 = vadd.s32 %v309_v63, %v299_v62  ;;  %v281_v15 = vadd.s32 %v280_v8, %v270_v7 }
  0xe5   : > { %v311_v16 = vadd.s32 %v310_v11, %v301_v10  ;;  %v282_v18 = vadd.s32 %v281_v15, %v272_v14 }
  0xe7   : > { %v312_v19 = vshrl.u32 %v311_v16, 4  ;;  %v283_v21 = vshrl.u32 %v282_v18, 4 }
  0xe9   : > { %v313_v22 = vmul.u32 18, %v312_v19  ;;  %v284_v4 = vmul.u32 18, %v283_v21 }
  0xeb   : > { %v314_v24 = vsub.s32 %v1137_v26, %v313_v22  ;;  %v285_v5 = vsub.s32 %v1141_v28, %v284_v4 }
  0xed   : > { %vm319_vm12 = vcmp.ne.s32.totalorder %v314_v24, 0  ;;  %vm322_vm13 = vcmp.lt.s32.totalorder %v314_v24, 0  ;;  %v328_v9 = vadd.s32 18, %v314_v24  ;;  %vm318_vm9 = vcmp.ne.s32.totalorder %v285_v5, 0 }
  0xee   : > { %vm325_vm10 = vmand %vm322_vm13, %vm319_vm12  ;;  %vm321_vm8 = vcmp.lt.s32.totalorder %v285_v5, 0  ;;  %v327_v30 = vadd.s32 18, %v285_v5  ;;  %vm332_vm13 = vcmp.lt.s32.totalorder %v329_v25, 16 }
  0xef   : > { %v331_v31 = vsel %vm325_vm10, %v328_v9, %v314_v24  ;;  %vm324_vm7 = vmand %vm321_vm8, %vm318_vm9  ;;  %vm1306_vm9 = vcmask 891904   ;;  %vm1309_vm10 = vcmask 1031168  }
  0xf0   : > { %vm334_vm5 = vcmp.lt.s32.totalorder %v331_v31, 16  ;;  %v330_v28 = vsel %vm324_vm7, %v327_v30, %v285_v5  ;;  %vm593_vm7 = vcmask 154628  }
  0xf1   : > { %vm340_vm12 = vmand %vm334_vm5, %vm337_vm4  ;;  %vm333_vm14 = vcmp.lt.s32.totalorder %v330_v28, 16  ;;  %vm583_vm4 = vcmask 154624  }
  0xf2   : > { %vm591_vm5 = vmor %vm590_vm6, %vm343_vm11  ;;  %vm1307_vm11 = vcmask 883712  }
  0xf3   : > { %vm594_vm8 = vmor %vm593_vm7, %vm453_vm1 }
  0xf4   : > { %vm1314_vm6 = vmmov %vm1307_vm11 }
 0x157   : > { %v557_v33 = vpop.f32.mrf.mxu2 }
 0x158   : > { %v531_v34 = vpop.f32.mrf.mxu0  ;;  %v544_v35 = vpop.f32.mrf.mxu1  ;;  %v558_v36 = vadd.f32 %v557_v33, %v507_v32 }
 0x159   : > { %v532_v37 = vadd.f32 %v531_v34, %v507_v32  ;;  %v545_v38 = vadd.f32 %v544_v35, %v507_v32 }
 0x15a   : > { %v563_v39 = vmax.f32 %v558_v36, 0.0 }
 0x15b   : > { %v561_v40 = vmax.f32 %v532_v37, 0.0  ;;  %v562_v41 = vmax.f32 %v545_v38, 0.0 }
 0x15c   : > { %v572_v42 = vsel %vm340_vm12, %v563_v39, 0.0  ;;  %vm1310_vm12 = vcmask 1039360  }
 0x15d   : > { %v570_v43 = vsel %vm332_vm13, %v561_v40, 0.0  ;;  %v571_v44 = vsel %vm333_vm14, %v562_v41, 0.0  ;;  %v574_v26 = vpack.c.bf16 %v572_v42, %v572_v42  ;;  %vm1311_vm13 = vcmask 588800  }
 0x15e   : > { %v573_v45 = vpack.c.bf16 %v571_v44, %v570_v43  ;;  %v754_v43 = vld [vmem:[%s1295_s3] sm:$0xf] }
 0x15f   : > { %579 = vrot.lane.b32.xlu1 %v574_v26, %s965_s11  ;;  %v559_v46 = vpop.f32.mrf.mxu2 }
 0x160   : > { %v533_v47 = vpop.f32.mrf.mxu0  ;;  %v546_v48 = vpop.f32.mrf.mxu1  ;;  %577 = vrot.lane.b32.xlu0 %v573_v45, %s965_s11 }
 0x161   : > { %v757_v48 = vunpack.c.l.bf16 %v1010_v0 }
 0x1d1   : > { %v580_v49 = vpop.permute.xlu1 %579 }
 0x1d2   : > { %v578_v50 = vpop.permute.xlu0 %577  ;;  %v582_v51 = vrot.slane %v580_v49, 4 }
 0x1d3   : > { %v581_v52 = vrot.slane %v578_v50, 4 }
 0x1d5   : > { %v584_v53 = vsel %vm583_vm4, %v581_v52, %v578_v50  ;;  %v586_v54 = vsel %vm453_vm1, %v581_v52, %v582_v51  ;;  %v759_v50 = vld [vmem:[%s1296_s4] sm:$0xff]  ;;  %v755_v51 = vunpack.c.l.bf16 %v1012_v1  ;;  %v756_v52 = vunpack.c.h.bf16 %v1012_v1 }
 0x1d6   : > { %592 = vst.msk [vmem:[#allocation2] sm:$0xff] %vm591_vm5, %v584_v53  ;;  %v587_v55 = vsel %vm583_vm4, %v586_v54, %v580_v49  ;;  %v758_v49 = vunpack.c.h.bf16 %v1010_v0  ;;  %vm1318_vm4 = vmmov %vm1308_vm15 }
 0x1d7   : > { %595 = vst.msk [vmem:[#allocation2 + $0x8] sm:$0xff] %vm594_vm8, %v587_v55  ;;  %vm1319_vm5 = vmmov %vm1318_vm4 }
 0x1d8   : > { %v942_v55 = vpack.i.bf16 %v758_v49, %v757_v48  ;;  %vm1320_vm8 = vmmov %vm1310_vm12 }
 0x1dd   : > { %v598_v56 = vld [vmem:[#allocation2] sm:$0xff] }
 0x1de   : > { %v611_v58 = vunpack.c.h.b16 %v598_v56  ;;  %v610_v59 = vunpack.c.l.b16 %v598_v56  ;;  %v599_v62 = vld [vmem:[#allocation2 + $0x8] sm:$0xff]  ;;  %v937_v56 = vpack.i.bf16 %v756_v52, %v755_v51 }
 0x1df   : > { %v612_v63 = vunpack.c.l.b16 %v599_v62  ;;  %v613_v3 = vunpack.c.h.b16 %v599_v62 }
 0x1e0   : > { %v1170_v60 = vpack.c.b16 %v611_v58, %v611_v58  ;;  %v1172_v61 = vpack.c.b16 %v610_v59, %v610_v59 }
 0x1e1   : > { %v616_v2 = vpack.c.b16 %v612_v63, %v612_v63  ;;  %v617_v6 = vpack.c.b16 %v613_v3, %v613_v3 }
 0x1e2   : > { %697 = vrot.lane.b32.xlu0 %v1170_v60, %s956_s24  ;;  %673 = vrot.lane.b32.xlu1 %v1172_v61, %s957_s25 }
 0x1e3   : > { %695 = vrot.lane.b32.xlu2 %v1172_v61, %s956_s24 }
 0x1ea   : > { %684 = vrot.lane.b32.xlu0 %v1172_v61, %s958_s26  ;;  %686 = vrot.lane.b32.xlu1 %v1170_v60, %s958_s26 }
 0x1eb   : > { %675 = vrot.lane.b32.xlu2 %v1170_v60, %s957_s25 }
 0x1f2   : > { %662 = vrot.lane.b32.xlu0 %v1172_v61, %s960_s28  ;;  %651 = vrot.lane.b32.xlu1 %v1172_v61, %s959_s27 }
 0x1f3   : > { %653 = vrot.lane.b32.xlu2 %v1170_v60, %s959_s27 }
 0x1fa   : > { %629 = vrot.lane.b32.xlu0 %v1172_v61, %s961_s29  ;;  %664 = vrot.lane.b32.xlu1 %v1170_v60, %s960_s28 }
 0x1fb   : > { %640 = vrot.lane.b32.xlu2 %v1172_v61, %s962_s30 }
 0x202   : > { %642 = vrot.lane.b32.xlu0 %v1170_v60, %s962_s30  ;;  %631 = vrot.lane.b32.xlu1 %v1170_v60, %s961_s29 }
 0x203   : > { %618 = vrot.lane.b32.xlu2 %v1172_v61, %s963_s6 }
 0x20a   : > { %620 = vrot.lane.b32.xlu0 %v1170_v60, %s963_s6  ;;  %688 = vrot.lane.b32.xlu1 %v616_v2, %s958_s26 }
 0x20b   : > { %699 = vrot.lane.b32.xlu2 %v616_v2, %s956_s24 }
 0x212   : > { %701 = vrot.lane.b32.xlu0 %v617_v6, %s956_s24  ;;  %655 = vrot.lane.b32.xlu1 %v616_v2, %s959_s27 }
 0x213   : > { %677 = vrot.lane.b32.xlu2 %v616_v2, %s957_s25 }
 0x21a   : > { %679 = vrot.lane.b32.xlu0 %v617_v6, %s957_s25  ;;  %668 = vrot.lane.b32.xlu1 %v617_v6, %s960_s28 }
 0x21b   : > { %690 = vrot.lane.b32.xlu2 %v617_v6, %s958_s26 }
 0x222   : > { %666 = vrot.lane.b32.xlu0 %v616_v2, %s960_s28  ;;  %633 = vrot.lane.b32.xlu1 %v616_v2, %s961_s29 }
 0x223   : > { %657 = vrot.lane.b32.xlu2 %v617_v6, %s959_s27 }
 0x22a   : > { %644 = vrot.lane.b32.xlu0 %v616_v2, %s962_s30  ;;  %646 = vrot.lane.b32.xlu1 %v617_v6, %s962_s30 }
 0x22b   : > { %635 = vrot.lane.b32.xlu2 %v617_v6, %s961_s29 }
 0x232   : > { %624 = vrot.lane.b32.xlu0 %v617_v6, %s963_s6  ;;  %762 = vperm.xlu1 %936, %v759_v50  }
 0x233   : > { %622 = vrot.lane.b32.xlu2 %v616_v2, %s963_s6 }
 0x23a   : > { %943 = vrot.lane.b32.xlu0 %v942_v55, %s959_s27 }
 0x23b   : > { %938 = vrot.lane.b32.xlu2 %v937_v56, %s959_s27 }
 0x23d   : > { %v696_v7 = vpop.permute.xlu2 %695 }
 0x245   : > { %v676_v8 = vpop.permute.xlu2 %675 }
 0x24d   : > { %v1222_v10 = vpop.permute.xlu2 %653 }
 0x254   : > { %v698_v11 = vpop.permute.xlu0 %697  ;;  %v674_v12 = vpop.permute.xlu1 %673 }
 0x255   : > { %v641_v13 = vpop.permute.xlu2 %640  ;;  %v703_v14 = vsel %vm449_vm0, %v696_v7, %v698_v11  ;;  %v681_v18 = vsel %vm425_vm2, %v674_v12, %v676_v8 }
 0x256   : > { %v769_v15 = vsel %vm453_vm1, %v703_v14, 0 }
 0x257   : > { %780 = vmatpush.bf16.msra.mxu3 %v769_v15 }
 0x25c   : > { %v685_v16 = vpop.permute.xlu0 %684  ;;  %v687_v17 = vpop.permute.xlu1 %686 }
 0x25d   : > { %v619_v19 = vpop.permute.xlu2 %618  ;;  %v692_v20 = vsel %vm437_vm3, %v685_v16, %v687_v17 }
 0x25e   : > { %v744_v21 = vsel %vm453_vm1, %v681_v18, %v692_v20 }
 0x25f   : > { %781 = vmatpush.bf16.msra.mxu3 %v744_v21 }
 0x264   : > { %v663_v22 = vpop.permute.xlu0 %662  ;;  %v652_v23 = vpop.permute.xlu1 %651 }
 0x265   : > { %v700_v4 = vpop.permute.xlu2 %699  ;;  %v659_v57 = vsel %vm1306_vm9, %v652_v23, %v1222_v10 }
 0x266   : > { %v704_v24 = vsel %vm449_vm0, %v698_v11, %v700_v4 }
 0x267   : > { %v772_v27 = vsel %vm453_vm1, %v704_v24, 0 }
 0x268   : > { %793 = vmatpush.bf16.msrb.mxu0 %v772_v27 }
 0x26c   : > { %v630_v5 = vpop.permute.xlu0 %629  ;;  %v665_v9 = vpop.permute.xlu1 %664 }
 0x26d   : > { %v670_v29 = vsel %vm1307_vm11, %v663_v22, %v665_v9  ;;  %v678_v31 = vpop.permute.xlu2 %677  ;;  %vm1322_vm11 = vmmov %vm1311_vm13 }
 0x26e   : > { %v732_v30 = vsel %vm453_vm1, %v659_v57, %v670_v29  ;;  %v682_v37 = vsel %vm425_vm2, %v676_v8, %v678_v31 }
 0x26f   : > { %782 = vmatpush.bf16.msra.mxu3 %v732_v30 }
 0x274   : > { %v643_v32 = vpop.permute.xlu0 %642  ;;  %v632_v25 = vpop.permute.xlu1 %631 }
 0x275   : > { %v648_v28 = vsel %vm1308_vm15, %v641_v13, %v643_v32  ;;  %v637_v33 = vsel %vm1309_vm10, %v630_v5, %v632_v25  ;;  %v691_v38 = vpop.permute.xlu2 %690  ;;  %vm1323_vm15 = vmmov %vm1322_vm11 }
 0x276   : > { %v720_v34 = vsel %vm453_vm1, %v637_v33, %v648_v28 }
 0x277   : > { %783 = vmatpush.bf16.msra.mxu3 %v720_v34 }
 0x27c   : > { %v621_v35 = vpop.permute.xlu0 %620  ;;  %v689_v36 = vpop.permute.xlu1 %688 }
 0x27d   : > { %v626_v39 = vsel %vm1310_vm12, %v619_v19, %v621_v35  ;;  %v693_v40 = vsel %vm437_vm3, %v687_v17, %v689_v36  ;;  %v658_v47 = vpop.permute.xlu2 %657  ;;  %v694_v58 = vsel %vm437_vm3, %v689_v36, %v691_v38  ;;  %vm1315_vm3 = vmmov %vm1314_vm6  ;;  %v597_v17 = vld [vmem:[#allocation2 + $0x8] sm:$0xf] }
 0x27e   : > { %v708_v41 = vsel %vm453_vm1, %v1172_v61, %v626_v39  ;;  %v748_v42 = vsel %vm453_vm1, %v682_v37, %v693_v40  ;;  %v604_v21 = vunpack.c.l.b16 %v597_v17 }
 0x27f   : > { %784 = vmatpush.bf16.msra.mxu3 %v708_v41  ;;  %794 = vmatpush.bf16.msrb.mxu0 %v748_v42 }
 0x282   : > { %910 = vmatmul.msk.bf16.vlgmr.msra.gmra.mxu3 %vm1311_vm13, %v754_v43 }
 0x284   : > { %v702_v44 = vpop.permute.xlu0 %701  ;;  %v656_v26 = vpop.permute.xlu1 %655 }
 0x285   : > { %v705_v45 = vsel %vm449_vm0, %v700_v4, %v702_v44  ;;  %v636_v0 = vpop.permute.xlu2 %635  ;;  %vm1312_vm0 = vmmov %vm1306_vm9  ;;  %v607_v4 = vpack.c.b16 %v604_v21, %v604_v21 }
 0x286   : > { %v775_v46 = vsel %vm453_vm1, %v705_v45, 0  ;;  %v660_v1 = vsel %vm1312_vm0, %v1222_v10, %v656_v26  ;;  %vm1313_vm14 = vmmov %vm1312_vm0 }
 0x287   : > { %806 = vmatpush.bf16.msrb.mxu1 %v775_v46  ;;  %v661_v2 = vsel %vm1313_vm14, %v656_v26, %v658_v47  ;;  %vm1321_vm9 = vmmov %vm1320_vm8 }
 0x288   : > { %vm1326_vm12 = vmmov %vm1312_vm0 }
 0x28c   : > { %v680_v53 = vpop.permute.xlu0 %679  ;;  %v669_v54 = vpop.permute.xlu1 %668 }
 0x28d   : > { %v683_v59 = vsel %vm425_vm2, %v678_v31, %v680_v53  ;;  %v623_v11 = vpop.permute.xlu2 %622  ;;  %vm1316_vm2 = vmmov %vm1309_vm10 }
 0x28e   : > { %v752_v61 = vsel %vm453_vm1, %v683_v59, %v694_v58  ;;  %vm1317_vm7 = vmmov %vm1316_vm2  ;;  %v627_v20 = vsel %vm1320_vm8, %v621_v35, %v623_v11 }
 0x28f   : > { %807 = vmatpush.bf16.msrb.mxu1 %v752_v61  ;;  %v712_v22 = vsel %vm453_vm1, %v1170_v60, %v627_v20  ;;  %vm1324_vm10 = vmmov %vm1312_vm0 }
 0x294   : > { %v667_v62 = vpop.permute.xlu0 %666  ;;  %v634_v63 = vpop.permute.xlu1 %633 }
 0x295   : > { %v671_v3 = vsel %vm1314_vm6, %v665_v9, %v667_v62  ;;  %v672_v6 = vsel %vm1315_vm3, %v667_v62, %v669_v54  ;;  %v638_v14 = vsel %vm1316_vm2, %v632_v25, %v634_v63  ;;  %v639_v15 = vsel %vm1317_vm7, %v634_v63, %v636_v0  ;;  %v939_v5 = vpop.permute.xlu2 %938 }
 0x296   : > { %v736_v7 = vsel %vm453_vm1, %v660_v1, %v671_v3  ;;  %v740_v8 = vsel %vm453_vm1, %v661_v2, %v672_v6  ;;  %v941_v9 = vunpack.i.h.bf16 %v939_v5  ;;  %v940_v57 = vunpack.i.l.bf16 %v939_v5 }
 0x297   : > { %795 = vmatpush.bf16.msrb.mxu0 %v736_v7  ;;  %808 = vmatpush.bf16.msrb.mxu1 %v740_v8 }
 0x298   : > { %v829_v30 = vsel %vm1324_vm10, %v940_v57, %v941_v9 }
 0x29c   : > { %v645_v12 = vpop.permute.xlu0 %644  ;;  %v647_v13 = vpop.permute.xlu1 %646 }
 0x29d   : > { %v649_v10 = vsel %vm1318_vm4, %v643_v32, %v645_v12  ;;  %v650_v16 = vsel %vm1319_vm5, %v645_v12, %v647_v13 }
 0x29e   : > { %v724_v18 = vsel %vm453_vm1, %v638_v14, %v649_v10  ;;  %v728_v19 = vsel %vm453_vm1, %v639_v15, %v650_v16 }
 0x29f   : > { %796 = vmatpush.bf16.msrb.mxu0 %v724_v18  ;;  %809 = vmatpush.bf16.msrb.mxu1 %v728_v19 }
 0x2a3   : > { %797 = vmatpush.bf16.msrb.mxu0 %v712_v22 }
 0x2a4   : > { %v625_v23 = vpop.permute.xlu0 %624  ;;  %v763_v60 = vpop.permute.xlu1 %762 }
 0x2a5   : > { %v628_v24 = vsel %vm1321_vm9, %v623_v11, %v625_v23 }
 0x2a6   : > { %911 = vmatmul.msk.bf16.vlgmr.msrb.gmra.mxu0 %vm1322_vm11, %v754_v43  ;;  %v716_v27 = vsel %vm453_vm1, %v607_v4, %v628_v24  ;;  %vm1325_vm1 = vmmov %vm1312_vm0 }
 0x2a7   : > { %810 = vmatpush.bf16.msrb.mxu1 %v716_v27 }
 0x2aa   : > { %912 = vmatmul.msk.bf16.vlgmr.msrb.gmra.mxu1 %vm1323_vm15, %v754_v43 }
 0x2ac   : > { %v944_v33 = vpop.permute.xlu0 %943 }
 0x2ad   : > { %v945_v34 = vunpack.i.l.bf16 %v944_v33  ;;  %v946_v36 = vunpack.i.h.bf16 %v944_v33 }
 0x2af   : > { %v830_v37 = vsel %vm1325_vm1, %v941_v9, %v945_v34  ;;  %v831_v41 = vsel %vm1326_vm12, %v945_v34, %v946_v36 }
 0x305   : > { %v786_v29 = vpop.f32.mrf.mxu3 }
 0x306   : > { %v787_v31 = vadd.f32 %v786_v29, %v763_v60 }
 0x308   : > { %v835_v32 = vadd.f32 %v829_v30, %v787_v31 }
 0x30a   : > { %v838_v25 = vmax.f32 %v835_v32, 0.0 }
 0x30c   : > { %841 = vst [vmem:[%s224_s21] sm:$0xff] %v838_v25 }
 0x30d   : > { %v788_v28 = vpop.f32.mrf.mxu3 }
 0x323   : > { %v799_v35 = vpop.f32.mrf.mxu0 }
 0x324   : > { %v800_v38 = vadd.f32 %v799_v35, %v763_v60 }
 0x326   : > { %v836_v39 = vadd.f32 %v830_v37, %v800_v38 }
 0x327   : > { %v812_v40 = vpop.f32.mrf.mxu1 }
 0x328   : > { %v813_v42 = vadd.f32 %v812_v40, %v763_v60  ;;  %v839_v43 = vmax.f32 %v836_v39, 0.0 }
 0x32a   : > { %v837_v44 = vadd.f32 %v831_v41, %v813_v42  ;;  %842 = vst [vmem:[%s224_s21 + $0x8] sm:$0xff] %v839_v43 }
 0x32b   : > { %v801_v26 = vpop.f32.mrf.mxu0 }
 0x32c   : > { %v840_v45 = vmax.f32 %v837_v44, 0.0 }
 0x32e   : > { %843 = vst [vmem:[%s224_s21 + $0x10] sm:$0xff] %v840_v45 }
 0x32f   : > { %v814_v46 = vpop.f32.mrf.mxu1 }
 0x330 PF: > { %s15_s18 = sadd.s32 1, %s954_s18  }
 0x331   : > { %p12_p4 = scmp.ge.s32.totalorder %s15_s18, 4  }
 0x333   :  { %14 = sbr.rel (!%p12_p4) target bundleno = 1 (0x1), region = 70 }

</bundles_post_ra>
